<compile_context>
chip_gen: v5e
topology: v5e:2x2
jax: 0.10.0
libtpu: 0.0.40
codegen_flags: <defaults>
</compile_context>

<pallas_src>
import functools

import jax
import jax.numpy as jnp
from jax.experimental import pallas as pl
from jax.experimental.pallas import tpu as pltpu

N_IN = 8
N_HID = 128
N_OUT = 30
N_OUT_PAD = 128  # lane-dense padded logits width (multiple of 128)


def _round_up(x, m):
    return ((x + m - 1) // m) * m


def _default_epilogue_dtype():
    """bf16 epilogue on chips with a bf16 VALU (v6e / v7x), f32 otherwise (v5e)."""
    try:
        kind = jax.devices()[0].device_kind.lower()
    except Exception:
        return jnp.float32
    if ("v6" in kind) or ("v7" in kind) or ("7x" in kind):
        return jnp.bfloat16
    return jnp.float32  # safe default: correct everywhere, fastest on v5e


def mlp_kernel(x_ref,
               w1_ref, b1_ref,
               w2_ref, b2_ref,
               w3_ref, b3_ref,
               w4_ref, b4_ref,
               o_ref):
    """One batch tile: 4 fused matmuls on the MXU with f32 accumulation.

    Dtype policy is data-driven: weights carry the MXU operand dtype (bf16),
    biases carry the epilogue dtype (bf16 on v6e/v7x, f32 on v5e).
    """
    wdt = w1_ref.dtype   # MXU operand dtype
    edt = b1_ref.dtype   # epilogue (bias-add / ReLU) dtype

    def layer(h, w_ref, b_ref, relu):
        y = jnp.dot(h, w_ref[...], preferred_element_type=jnp.float32)
        y = y.astype(edt) + b_ref[...]
        if relu:
            y = jnp.maximum(y, 0.0)
        return y

    h = layer(x_ref[...], w1_ref, b1_ref, True).astype(wdt)   # (TB,8)@(8,128)
    h = layer(h, w2_ref, b2_ref, True).astype(wdt)            # (TB,128)@(128,128)
    h = layer(h, w3_ref, b3_ref, True).astype(wdt)            # (TB,128)@(128,128)
    o_ref[...] = layer(h, w4_ref, b4_ref, False).astype(o_ref.dtype)  # padded logits


def prepare_params(params, *, epilogue_dtype=None, weight_dtype=jnp.bfloat16):
    """One-time prep: cast weights to bf16, biases to the epilogue dtype, and
    zero-pad the last layer to 128 output lanes (lane-dense stores)."""
    if epilogue_dtype is None:
        epilogue_dtype = _default_epilogue_dtype()
    p = {
        "w1": params["w1"].astype(weight_dtype),
        "w2": params["w2"].astype(weight_dtype),
        "w3": params["w3"].astype(weight_dtype),
        "w4": jnp.pad(params["w4"],
                      ((0, 0), (0, N_OUT_PAD - N_OUT))).astype(weight_dtype),
        "b1": params["b1"].astype(epilogue_dtype),
        "b2": params["b2"].astype(epilogue_dtype),
        "b3": params["b3"].astype(epilogue_dtype),
        "b4": jnp.pad(params["b4"],
                      ((0, 0), (0, N_OUT_PAD - N_OUT))).astype(epilogue_dtype),
    }
    return p


@functools.partial(jax.jit, static_argnames=("tb",))
def mlp_forward_padded(x, prepped, *, tb=2048):
    """x: (B, 8) float32; prepped: output of `prepare_params`.

    Returns padded bf16 logits of shape (B_pad, 128); consumers should fuse
    the [:B, :30] slice downstream to avoid an extra HBM round trip.
    """
    B = x.shape[0]

    # Batch tile: multiple of 128, capped by the batch, and capped again so
    # the grid has >= 2 steps when possible (v7x: both TensorCores busy).
    tb_target = max(128, (int(tb) // 128) * 128)
    b_ceil = _round_up(max(B, 1), 128)
    TB = min(tb_target, b_ceil)
    if b_ceil > 128:
        TB = min(TB, _round_up((b_ceil + 1) // 2, 128))
    B_pad = _round_up(B, TB)

    x = x.astype(jnp.bfloat16)                    # halves the (TB,8) input DMA
    if B_pad != B:
        x = jnp.pad(x, ((0, B_pad - B), (0, 0)))

    grid = (B_pad // TB,)

    out = pl.pallas_call(
        mlp_kernel,
        out_shape=jax.ShapeDtypeStruct((B_pad, N_OUT_PAD), jnp.bfloat16),
        grid=grid,
        in_specs=[
            pl.BlockSpec((TB, N_IN), lambda i: (i, 0)),           # x (batch-tiled)
            pl.BlockSpec((N_IN, N_HID), lambda i: (0, 0)),        # w1 (resident)
            pl.BlockSpec((1, N_HID), lambda i: (0, 0)),           # b1
            pl.BlockSpec((N_HID, N_HID), lambda i: (0, 0)),       # w2
            pl.BlockSpec((1, N_HID), lambda i: (0, 0)),           # b2
            pl.BlockSpec((N_HID, N_HID), lambda i: (0, 0)),       # w3
            pl.BlockSpec((1, N_HID), lambda i: (0, 0)),           # b3
            pl.BlockSpec((N_HID, N_OUT_PAD), lambda i: (0, 0)),   # w4 (padded)
            pl.BlockSpec((1, N_OUT_PAD), lambda i: (0, 0)),       # b4 (padded)
        ],
        out_specs=pl.BlockSpec((TB, N_OUT_PAD), lambda i: (i, 0)),
        compiler_params=pltpu.CompilerParams(
            dimension_semantics=("parallel",),        # shard batch across TCs
            vmem_limit_bytes=32 * 1024 * 1024),       # big tiles OK on v5e too
    )(x, prepped["w1"], prepped["b1"], prepped["w2"], prepped["b2"],
      prepped["w3"], prepped["b3"], prepped["w4"], prepped["b4"])

    return out


def mlp_forward(x, prepped, *, tb=2048):
    """Convenience wrapper returning (B, 30) logits (bf16). The slice here
    materializes a copy; prefer mlp_forward_padded + fused downstream slice."""
    out = mlp_forward_padded(x, prepped, tb=tb)
    return out[: x.shape[0], :N_OUT]


def init_params(key):
    """Kaiming-uniform-style init matching torch.nn.Linear defaults.
    Weights stored as (in_features, out_features) so the kernel computes
    x @ W + b directly."""
    dims = [(N_IN, N_HID), (N_HID, N_HID), (N_HID, N_HID), (N_HID, N_OUT)]
    params = {}
    for i, (fan_in, fan_out) in enumerate(dims, start=1):
        key, kw, kb = jax.random.split(key, 3)
        bound = 1.0 / jnp.sqrt(fan_in)
        params[f"w{i}"] = jax.random.uniform(
            kw, (fan_in, fan_out), jnp.float32, -bound, bound)
        params[f"b{i}"] = jax.random.uniform(
            kb, (1, fan_out), jnp.float32, -bound, bound)
    return params


def reference_forward(x, params, *, epilogue_dtype=jnp.float32):
    """Pure-JAX reference mirroring the kernel numerics: bf16 matmul operands,
    f32 MXU accumulation, bias/ReLU in `epilogue_dtype`."""
    wdt = jnp.bfloat16

    def layer(h, w, b, relu):
        y = jnp.dot(h.astype(wdt), w.astype(wdt),
                    preferred_element_type=jnp.float32)
        y = y.astype(epilogue_dtype) + b.astype(epilogue_dtype)
        if relu:
            y = jnp.maximum(y, 0.0)
        return y

    h = layer(x, params["w1"], params["b1"], True)
    h = layer(h, params["w2"], params["b2"], True)
    h = layer(h, params["w3"], params["b3"], True)
    return layer(h, params["w4"], params["b4"], False)


if __name__ == "__main__":
    key = jax.random.PRNGKey(0)
    key, kx1, kx2 = jax.random.split(key, 3)

    params = init_params(key)
    epi_dtype = _default_epilogue_dtype()
    # One-time weight prep (hoisted out of the per-call forward).
    prepped = jax.block_until_ready(prepare_params(params, epilogue_dtype=epi_dtype))

    # Small batch: single grid step.
    B1 = 8
    x1 = jax.random.normal(kx1, (B1, N_IN), jnp.float32)
    out1 = jax.block_until_ready(mlp_forward(x1, prepped))
    ref1 = reference_forward(x1, params, epilogue_dtype=epi_dtype)
    assert out1.shape == (B1, N_OUT), out1.shape
    assert jnp.allclose(out1.astype(jnp.float32), ref1.astype(jnp.float32),
                        atol=2e-2, rtol=2e-2), "mismatch (B=8)"

    # Ragged batch: padded to B_pad, >=2 grid steps (exercises pipelining and
    # the v7x two-core split).
    B2 = 300
    x2 = jax.random.normal(kx2, (B2, N_IN), jnp.float32)
    out2 = jax.block_until_ready(mlp_forward(x2, prepped))
    ref2 = reference_forward(x2, params, epilogue_dtype=epi_dtype)
    assert out2.shape == (B2, N_OUT), out2.shape
    assert jnp.allclose(out2.astype(jnp.float32), ref2.astype(jnp.float32),
                        atol=2e-2, rtol=2e-2), "mismatch (B=300)"

    print("KERNEL_OK")
</pallas_src>

<mosaic_0001>
module attributes {stable_mosaic.version = 11 : i64} {
  func.func @mlp_kernel(%arg0: i32, %arg1: memref<128x8xbf16, #tpu.memory_space<vmem>>, %arg2: memref<8x128xbf16, #tpu.memory_space<vmem>>, %arg3: memref<1x128xf32, #tpu.memory_space<vmem>>, %arg4: memref<128x128xbf16, #tpu.memory_space<vmem>>, %arg5: memref<1x128xf32, #tpu.memory_space<vmem>>, %arg6: memref<128x128xbf16, #tpu.memory_space<vmem>>, %arg7: memref<1x128xf32, #tpu.memory_space<vmem>>, %arg8: memref<128x128xbf16, #tpu.memory_space<vmem>>, %arg9: memref<1x128xf32, #tpu.memory_space<vmem>>, %arg10: memref<128x128xbf16, #tpu.memory_space<vmem>>) attributes {dimension_semantics = [#tpu.dimension_semantics<parallel>], iteration_bounds = array<i64: 1>, scalar_prefetch = 0 : i64, scratch_operands = 0 : i64, tpu.core_type = #tpu.core_type<tc>, window_params = [{transform_indices = @transform_0, window_bounds = array<i64: 128, 8>}, {pipeline_mode = #tpu.pipeline_mode<synchronous>, transform_indices = @transform_1, window_bounds = array<i64: 8, 128>}, {pipeline_mode = #tpu.pipeline_mode<synchronous>, transform_indices = @transform_2, window_bounds = array<i64: 1, 128>}, {pipeline_mode = #tpu.pipeline_mode<synchronous>, transform_indices = @transform_3, window_bounds = array<i64: 128, 128>}, {pipeline_mode = #tpu.pipeline_mode<synchronous>, transform_indices = @transform_4, window_bounds = array<i64: 1, 128>}, {pipeline_mode = #tpu.pipeline_mode<synchronous>, transform_indices = @transform_5, window_bounds = array<i64: 128, 128>}, {pipeline_mode = #tpu.pipeline_mode<synchronous>, transform_indices = @transform_6, window_bounds = array<i64: 1, 128>}, {pipeline_mode = #tpu.pipeline_mode<synchronous>, transform_indices = @transform_7, window_bounds = array<i64: 128, 128>}, {pipeline_mode = #tpu.pipeline_mode<synchronous>, transform_indices = @transform_8, window_bounds = array<i64: 1, 128>}, {transform_indices = @transform_9, window_bounds = array<i64: 128, 128>}]} {
    %c0 = arith.constant 0 : index
    %c0_0 = arith.constant 0 : index
    %0 = vector.load %arg1[%c0, %c0_0] : memref<128x8xbf16, #tpu.memory_space<vmem>>, vector<128x8xbf16>
    %c0_1 = arith.constant 0 : index
    %c0_2 = arith.constant 0 : index
    %1 = vector.load %arg2[%c0_1, %c0_2] : memref<8x128xbf16, #tpu.memory_space<vmem>>, vector<8x128xbf16>
    %cst = arith.constant dense<0.000000e+00> : vector<128x128xf32>
    %2 = tpu.matmul %0, %1, %cst {dimension_numbers = #tpu.dot_dimension_numbers<[1], [0], [0], [1], [0, 0, 1, 1], [], []>} : vector<128x8xbf16>, vector<8x128xbf16>, vector<128x128xf32> -> vector<128x128xf32>
    %c0_3 = arith.constant 0 : index
    %c0_4 = arith.constant 0 : index
    %3 = vector.load %arg3[%c0_3, %c0_4] : memref<1x128xf32, #tpu.memory_space<vmem>>, vector<1x128xf32>
    %4 = vector.broadcast %3 : vector<1x128xf32> to vector<128x128xf32>
    %5 = arith.addf %2, %4 : vector<128x128xf32>
    %cst_5 = arith.constant 0.000000e+00 : f32
    %6 = vector.broadcast %cst_5 : f32 to vector<128x128xf32>
    %7 = arith.maximumf %5, %6 : vector<128x128xf32>
    %8 = arith.truncf %7 : vector<128x128xf32> to vector<128x128xbf16>
    %c0_6 = arith.constant 0 : index
    %c0_7 = arith.constant 0 : index
    %9 = vector.load %arg4[%c0_6, %c0_7] : memref<128x128xbf16, #tpu.memory_space<vmem>>, vector<128x128xbf16>
    %cst_8 = arith.constant dense<0.000000e+00> : vector<128x128xf32>
    %10 = tpu.matmul %8, %9, %cst_8 {dimension_numbers = #tpu.dot_dimension_numbers<[1], [0], [0], [1], [0, 0, 1, 1], [], []>} : vector<128x128xbf16>, vector<128x128xbf16>, vector<128x128xf32> -> vector<128x128xf32>
    %c0_9 = arith.constant 0 : index
    %c0_10 = arith.constant 0 : index
    %11 = vector.load %arg5[%c0_9, %c0_10] : memref<1x128xf32, #tpu.memory_space<vmem>>, vector<1x128xf32>
    %12 = vector.broadcast %11 : vector<1x128xf32> to vector<128x128xf32>
    %13 = arith.addf %10, %12 : vector<128x128xf32>
    %cst_11 = arith.constant 0.000000e+00 : f32
    %14 = vector.broadcast %cst_11 : f32 to vector<128x128xf32>
    %15 = arith.maximumf %13, %14 : vector<128x128xf32>
    %16 = arith.truncf %15 : vector<128x128xf32> to vector<128x128xbf16>
    %c0_12 = arith.constant 0 : index
    %c0_13 = arith.constant 0 : index
    %17 = vector.load %arg6[%c0_12, %c0_13] : memref<128x128xbf16, #tpu.memory_space<vmem>>, vector<128x128xbf16>
    %cst_14 = arith.constant dense<0.000000e+00> : vector<128x128xf32>
    %18 = tpu.matmul %16, %17, %cst_14 {dimension_numbers = #tpu.dot_dimension_numbers<[1], [0], [0], [1], [0, 0, 1, 1], [], []>} : vector<128x128xbf16>, vector<128x128xbf16>, vector<128x128xf32> -> vector<128x128xf32>
    %c0_15 = arith.constant 0 : index
    %c0_16 = arith.constant 0 : index
    %19 = vector.load %arg7[%c0_15, %c0_16] : memref<1x128xf32, #tpu.memory_space<vmem>>, vector<1x128xf32>
    %20 = vector.broadcast %19 : vector<1x128xf32> to vector<128x128xf32>
    %21 = arith.addf %18, %20 : vector<128x128xf32>
    %cst_17 = arith.constant 0.000000e+00 : f32
    %22 = vector.broadcast %cst_17 : f32 to vector<128x128xf32>
    %23 = arith.maximumf %21, %22 : vector<128x128xf32>
    %24 = arith.truncf %23 : vector<128x128xf32> to vector<128x128xbf16>
    %c0_18 = arith.constant 0 : index
    %c0_19 = arith.constant 0 : index
    %25 = vector.load %arg8[%c0_18, %c0_19] : memref<128x128xbf16, #tpu.memory_space<vmem>>, vector<128x128xbf16>
    %cst_20 = arith.constant dense<0.000000e+00> : vector<128x128xf32>
    %26 = tpu.matmul %24, %25, %cst_20 {dimension_numbers = #tpu.dot_dimension_numbers<[1], [0], [0], [1], [0, 0, 1, 1], [], []>} : vector<128x128xbf16>, vector<128x128xbf16>, vector<128x128xf32> -> vector<128x128xf32>
    %c0_21 = arith.constant 0 : index
    %c0_22 = arith.constant 0 : index
    %27 = vector.load %arg9[%c0_21, %c0_22] : memref<1x128xf32, #tpu.memory_space<vmem>>, vector<1x128xf32>
    %28 = vector.broadcast %27 : vector<1x128xf32> to vector<128x128xf32>
    %29 = arith.addf %26, %28 : vector<128x128xf32>
    %30 = arith.truncf %29 : vector<128x128xf32> to vector<128x128xbf16>
    %c0_23 = arith.constant 0 : index
    %c0_24 = arith.constant 0 : index
    %31 = vector.load %arg10[%c0_23, %c0_24] : memref<128x128xbf16, #tpu.memory_space<vmem>>, vector<128x128xbf16>
    tpu.vector_store %arg10[%c0_23, %c0_24], %30 {strides = array<i32>} : memref<128x128xbf16, #tpu.memory_space<vmem>>, vector<128x128xbf16>,
    return
  }
  func.func @transform_0(%arg0: i32) -> (i32, i32) {
    %c0_i32 = arith.constant 0 : i32
    %c0_i32_0 = arith.constant 0 : i32
    return %arg0, %c0_i32 : i32, i32
  }
  func.func @transform_1(%arg0: i32) -> (i32, i32) {
    %c0_i32 = arith.constant 0 : i32
    %c0_i32_0 = arith.constant 0 : i32
    %c0_i32_1 = arith.constant 0 : i32
    return %c0_i32, %c0_i32_0 : i32, i32
  }
  func.func @transform_2(%arg0: i32) -> (i32, i32) {
    %c0_i32 = arith.constant 0 : i32
    %c0_i32_0 = arith.constant 0 : i32
    %c0_i32_1 = arith.constant 0 : i32
    return %c0_i32, %c0_i32_0 : i32, i32
  }
  func.func @transform_3(%arg0: i32) -> (i32, i32) {
    %c0_i32 = arith.constant 0 : i32
    %c0_i32_0 = arith.constant 0 : i32
    %c0_i32_1 = arith.constant 0 : i32
    return %c0_i32, %c0_i32_0 : i32, i32
  }
  func.func @transform_4(%arg0: i32) -> (i32, i32) {
    %c0_i32 = arith.constant 0 : i32
    %c0_i32_0 = arith.constant 0 : i32
    %c0_i32_1 = arith.constant 0 : i32
    return %c0_i32, %c0_i32_0 : i32, i32
  }
  func.func @transform_5(%arg0: i32) -> (i32, i32) {
    %c0_i32 = arith.constant 0 : i32
    %c0_i32_0 = arith.constant 0 : i32
    %c0_i32_1 = arith.constant 0 : i32
    return %c0_i32, %c0_i32_0 : i32, i32
  }
  func.func @transform_6(%arg0: i32) -> (i32, i32) {
    %c0_i32 = arith.constant 0 : i32
    %c0_i32_0 = arith.constant 0 : i32
    %c0_i32_1 = arith.constant 0 : i32
    return %c0_i32, %c0_i32_0 : i32, i32
  }
  func.func @transform_7(%arg0: i32) -> (i32, i32) {
    %c0_i32 = arith.constant 0 : i32
    %c0_i32_0 = arith.constant 0 : i32
    %c0_i32_1 = arith.constant 0 : i32
    return %c0_i32, %c0_i32_0 : i32, i32
  }
  func.func @transform_8(%arg0: i32) -> (i32, i32) {
    %c0_i32 = arith.constant 0 : i32
    %c0_i32_0 = arith.constant 0 : i32
    %c0_i32_1 = arith.constant 0 : i32
    return %c0_i32, %c0_i32_0 : i32, i32
  }
  func.func @transform_9(%arg0: i32) -> (i32, i32) {
    %c0_i32 = arith.constant 0 : i32
    %c0_i32_0 = arith.constant 0 : i32
    return %arg0, %c0_i32 : i32, i32
  }
}

</mosaic_0001>

<bundles_post_ra>
// kernel: mlp_forward_padded.1
= control target key start
LH: loop header
LB: loop body
LE: loop exit
PB: predicated region body
PF: predicated region fallthrough
CT: control target
= control target key end

     0   :  { %14 = vsyncpa [#allocation3], 0  ;;  %s1162_s0 = inlined_call_operand.vmem [shape: bf16[128,8], index: 0, kind: input, shape index: {}]   ;;  %s1163_s1 = inlined_call_operand.vmem [shape: bf16[8,128], index: 1, kind: input, shape index: {}]   ;;  %s1164_s2 = inlined_call_operand.vmem [shape: f32[1,128], index: 2, kind: input, shape index: {}]   ;;  %s1165_s3 = inlined_call_operand.vmem [shape: bf16[128,128], index: 3, kind: input, shape index: {}]   ;;  %s1166_s4 = inlined_call_operand.vmem [shape: f32[1,128], index: 4, kind: input, shape index: {}]   ;;  %s1167_s5 = inlined_call_operand.hbm [shape: bf16[128,128], index: 5, kind: input, shape index: {}]   ;;  %s1168_s6 = inlined_call_operand.vmem [shape: f32[1,128], index: 6, kind: input, shape index: {}]   ;;  %s1169_s7 = inlined_call_operand.hbm [shape: bf16[128,128], index: 7, kind: input, shape index: {}]   ;;  %s1170_s8 = inlined_call_operand.vmem [shape: f32[1,128], index: 8, kind: input, shape index: {}]   ;;  %s1171_s9 = inlined_call_operand.hbm [shape: bf16[128,128], index: 9, kind: output, shape index: {}]  }
   0x1   :  { %15 = vsyncpa [#allocation6], 0 }
   0x2   :  { %16 = vsyncpa [#allocation4], 0  ;;  %s31_s11 = sshll.u32 %s1167_s5, 4  ;;  %s982_s12 = smov [#allocation2]   ;;  %s32_s11 = int_to_ptr.hbm [resolvable:$true] %s31_s11 }
   0x3   :  { %s33_s13 = sshll.u32 %s982_s12, 4  ;;  %s46_s16 = sshll.u32 %s1169_s7, 4  ;;  %s34_s13 = int_to_ptr.vmem [resolvable:$true] %s33_s13  ;;  %s47_s16 = int_to_ptr.hbm [resolvable:$true] %s46_s16 }
   0x4   :  { %s983_s17 = smov 64   ;;  %s984_s18 = smov 4  }
   0x5   :  { %39 = dma.hbm_to_vmem [thread:$0]  %s32_s11, 1024, %s34_s13, [#allocation3], %s983_s17, %s983_s17, %s984_s18  }
   0x6   :  { %s985_s19 = smov [#allocation5]  }
   0x7   :  { %s48_s20 = sshll.u32 %s985_s19, 4  ;;  %s49_s20 = int_to_ptr.vmem [resolvable:$true] %s48_s20 }
   0x8   :  { %54 = dma.hbm_to_vmem [thread:$0]  %s47_s16, 1024, %s49_s20, [#allocation6], %s983_s17, %s983_s17, %s984_s18  }
   0x9   :  { %976 = dma.done.wait [#allocation3], 1024  }
   0xa   :  { %977 = vsyncadd [#allocation3], 4294966272 }
   0xb   :  { %978 = dma.done.wait [#allocation6], 1024  }
   0xc   :  { %979 = vsyncadd [#allocation6], 4294966272  ;;  %vm152_vm0 = vcmask 1043456   ;;  %v82_v0 = vld [vmem:[%s1163_s1] sm:$0xf]  ;;  %vm127_vm1 = vcmask 64512  }
   0xd   :  { %v154_v1 = vsel %vm152_vm0, %v82_v0, 0  ;;  %v816_v2 = vld [vmem:[%s1162_s0] sm:$0xff]  ;;  %v817_v3 = vld [vmem:[%s1162_s0 + $0x8] sm:$0xff]  ;;  %v818_v4 = vld [vmem:[%s1162_s0 + $0x10] sm:$0xff]  ;;  %s666_s15 = sshll.u32 %s1171_s9, 4  ;;  %s667_s15 = int_to_ptr.hbm [resolvable:$true] %s666_s15 }
   0xe   :  { %163 = vmatpush.bf16.msra.mxu0 %v154_v1  ;;  %v819_v5 = vld [vmem:[%s1162_s0 + $0x18] sm:$0xff]  ;;  %v820_v6 = vld [vmem:[%s1162_s0 + $0x20] sm:$0xff]  ;;  %v821_v8 = vld [vmem:[%s1162_s0 + $0x28] sm:$0xff] }
   0xf   :  { %v831_v7 = vld [vmem:[%s1165_s3 + $0x38] sm:$0xff]  ;;  %v830_v9 = vld [vmem:[%s1165_s3 + $0x30] sm:$0xff]  ;;  %v829_v10 = vld [vmem:[%s1165_s3 + $0x28] sm:$0xff] }
  0x10   :  { %297 = vmatpush.bf16.msra.mxu1 %v831_v7  ;;  %v828_v11 = vld [vmem:[%s1165_s3 + $0x20] sm:$0xff]  ;;  %v827_v12 = vld [vmem:[%s1165_s3 + $0x18] sm:$0xff]  ;;  %v822_v13 = vld [vmem:[%s1162_s0 + $0x30] sm:$0xff] }
  0x11   :  { %712 = vmatmul.msk.bf16.vlgmr.msra.gmra.mxu0 %vm127_vm1, %v816_v2  ;;  %v826_v14 = vld [vmem:[%s1165_s3 + $0x10] sm:$0xff]  ;;  %v825_v15 = vld [vmem:[%s1165_s3 + $0x8] sm:$0xff]  ;;  %v824_v16 = vld [vmem:[%s1165_s3] sm:$0xff] }
  0x12   :  { %v823_v17 = vld [vmem:[%s1162_s0 + $0x38] sm:$0xff]  ;;  %v1111_v19 = vld [vmem:[%s1164_s2] ss:$0 sm:$0xff]  ;;  %v838_v62 = vld [vmem:[#allocation2 + $0x30] sm:$0xff] }
  0x13   :  { %v839_v58 = vld [vmem:[#allocation2 + $0x38] sm:$0xff]  ;;  %v837_v0 = vld [vmem:[#allocation2 + $0x28] sm:$0xff]  ;;  %v836_v1 = vld [vmem:[#allocation2 + $0x20] sm:$0xff] }
  0x14   :  { %298 = vmatpush.bf16.msra.mxu1 %v830_v9  ;;  %438 = vmatpush.bf16.msra.mxu2 %v839_v58  ;;  %v834_v9 = vld [vmem:[#allocation2 + $0x10] sm:$0xff] }
  0x18   :  { %299 = vmatpush.bf16.msra.mxu1 %v829_v10  ;;  %439 = vmatpush.bf16.msra.mxu2 %v838_v62  ;;  %v847_v62 = vld [vmem:[#allocation5 + $0x38] sm:$0xff] }
  0x19   :  { %579 = vmatpush.bf16.msra.mxu3 %v847_v62 }
  0x1c   :  { %300 = vmatpush.bf16.msra.mxu1 %v828_v11  ;;  %440 = vmatpush.bf16.msra.mxu2 %v837_v0  ;;  %v833_v11 = vld [vmem:[#allocation2 + $0x8] sm:$0xff]  ;;  %v846_v0 = vld [vmem:[#allocation5 + $0x30] sm:$0xff] }
  0x1d   :  { %580 = vmatpush.bf16.msra.mxu3 %v846_v0 }
  0x20   :  { %301 = vmatpush.bf16.msra.mxu1 %v827_v12  ;;  %441 = vmatpush.bf16.msra.mxu2 %v836_v1  ;;  %v832_v12 = vld [vmem:[#allocation2] sm:$0xff]  ;;  %v845_v1 = vld [vmem:[#allocation5 + $0x28] sm:$0xff] }
  0x21   :  { %713 = vmatmul.msk.bf16.gmra.mxu0 %vm127_vm1, %v817_v3  ;;  %581 = vmatpush.bf16.msra.mxu3 %v845_v1 }
  0x24   :  { %302 = vmatpush.bf16.msra.mxu1 %v826_v14 }
  0x28   :  { %303 = vmatpush.bf16.msra.mxu1 %v825_v15 }
  0x2c   :  { %304 = vmatpush.bf16.msra.mxu1 %v824_v16 }
  0x31   :  { %714 = vmatmul.msk.bf16.gmra.mxu0 %vm127_vm1, %v818_v4 }
  0x41   :  { %715 = vmatmul.msk.bf16.gmra.mxu0 %vm127_vm1, %v819_v5  ;;  %v835_v5 = vld [vmem:[#allocation2 + $0x18] sm:$0xff] }
  0x42   :  { %442 = vmatpush.bf16.msra.mxu2 %v835_v5  ;;  %v844_v5 = vld [vmem:[#allocation5 + $0x20] sm:$0xff] }
  0x43   :  { %582 = vmatpush.bf16.msra.mxu3 %v844_v5 }
  0x46   :  { %443 = vmatpush.bf16.msra.mxu2 %v834_v9 }
  0x4a   :  { %444 = vmatpush.bf16.msra.mxu2 %v833_v11  ;;  %v842_v11 = vld [vmem:[#allocation5 + $0x10] sm:$0xff] }
  0x4e   :  { %445 = vmatpush.bf16.msra.mxu2 %v832_v12 }
  0x51   :  { %716 = vmatmul.msk.bf16.gmra.mxu0 %vm127_vm1, %v820_v6 }
  0x61   :  { %717 = vmatmul.msk.bf16.gmra.mxu0 %vm127_vm1, %v821_v8 }
  0x71   :  { %718 = vmatmul.msk.bf16.gmra.mxu0 %vm127_vm1, %v822_v13 }
  0x81   :  { %719 = vmatmul.msk.bf16.gmra.mxu0 %vm127_vm1, %v823_v17 }
  0x8e   :  { %v165_v18 = vpop.f32.mrf.mxu0 }
  0x8f   :  { %v166_v20 = vadd.f32 %v1111_v19, %v165_v18 }
  0x91   :  { %v205_v23 = vmax.f32 %v166_v20, 0.0 }
  0x96   :  { %v167_v21 = vpop.f32.mrf.mxu0 }
  0x97   :  { %v168_v22 = vadd.f32 %v1111_v19, %v167_v21  ;;  %v1132_v21 = vld [vmem:[%s1166_s4] ss:$0 sm:$0xff] }
  0x99   :  { %v206_v24 = vmax.f32 %v168_v22, 0.0 }
  0x9b   :  { %v221_v25 = vpack.c.bf16 %v206_v24, %v205_v23 }
  0x9d   :  { %305 = vmatmul.bf16.vlgmr.msra.gmra.mxu1 %v221_v25 }
  0x9e   :  { %v170_v26 = vpop.f32.mrf.mxu0 }
  0x9f   :  { %v171_v27 = vadd.f32 %v1111_v19, %v170_v26 }
  0xa1   :  { %v207_v30 = vmax.f32 %v171_v27, 0.0 }
  0xa6   :  { %v172_v28 = vpop.f32.mrf.mxu0 }
  0xa7   :  { %v173_v29 = vadd.f32 %v1111_v19, %v172_v28 }
  0xa9   :  { %v208_v31 = vmax.f32 %v173_v29, 0.0 }
  0xab   :  { %v222_v32 = vpack.c.bf16 %v208_v31, %v207_v30 }
  0xad   :  { %310 = vmatmul.bf16.gmra.mxu1 %v222_v32 }
  0xae   :  { %v175_v33 = vpop.f32.mrf.mxu0 }
  0xaf   :  { %v176_v34 = vadd.f32 %v1111_v19, %v175_v33 }
  0xb1   :  { %v209_v37 = vmax.f32 %v176_v34, 0.0 }
  0xb6   :  { %v177_v35 = vpop.f32.mrf.mxu0 }
  0xb7   :  { %v178_v36 = vadd.f32 %v1111_v19, %v177_v35 }
  0xb9   :  { %v210_v38 = vmax.f32 %v178_v36, 0.0 }
  0xbb   :  { %v223_v39 = vpack.c.bf16 %v210_v38, %v209_v37 }
  0xbd   :  { %315 = vmatmul.bf16.gmra.mxu1 %v223_v39 }
  0xbe   :  { %v180_v40 = vpop.f32.mrf.mxu0 }
  0xbf   :  { %v181_v41 = vadd.f32 %v1111_v19, %v180_v40 }
  0xc1   :  { %v211_v44 = vmax.f32 %v181_v41, 0.0 }
  0xc6   :  { %v182_v42 = vpop.f32.mrf.mxu0 }
  0xc7   :  { %v183_v43 = vadd.f32 %v1111_v19, %v182_v42 }
  0xc9   :  { %v212_v45 = vmax.f32 %v183_v43, 0.0 }
  0xcb   :  { %v224_v46 = vpack.c.bf16 %v212_v45, %v211_v44 }
  0xcd   :  { %320 = vmatmul.bf16.gmra.mxu1 %v224_v46 }
  0xce   :  { %v185_v47 = vpop.f32.mrf.mxu0 }
  0xcf   :  { %v186_v48 = vadd.f32 %v1111_v19, %v185_v47 }
  0xd1   :  { %v213_v51 = vmax.f32 %v186_v48, 0.0 }
  0xd6   :  { %v187_v49 = vpop.f32.mrf.mxu0 }
  0xd7   :  { %v188_v50 = vadd.f32 %v1111_v19, %v187_v49 }
  0xd9   :  { %v214_v52 = vmax.f32 %v188_v50, 0.0 }
  0xdb   :  { %v225_v53 = vpack.c.bf16 %v214_v52, %v213_v51 }
  0xdd   :  { %325 = vmatmul.bf16.gmra.mxu1 %v225_v53 }
  0xde   :  { %v190_v54 = vpop.f32.mrf.mxu0 }
  0xdf   :  { %v191_v55 = vadd.f32 %v1111_v19, %v190_v54 }
  0xe1   :  { %v215_v59 = vmax.f32 %v191_v55, 0.0 }
  0xe6   :  { %v192_v56 = vpop.f32.mrf.mxu0 }
  0xe7   :  { %v193_v57 = vadd.f32 %v1111_v19, %v192_v56 }
  0xe9   :  { %v216_v60 = vmax.f32 %v193_v57, 0.0 }
  0xeb   :  { %v226_v61 = vpack.c.bf16 %v216_v60, %v215_v59 }
  0xed   :  { %330 = vmatmul.bf16.gmra.mxu1 %v226_v61 }
  0xee   :  { %v195_v63 = vpop.f32.mrf.mxu0 }
  0xef   :  { %v196_v2 = vadd.f32 %v1111_v19, %v195_v63 }
  0xf1   :  { %v217_v6 = vmax.f32 %v196_v2, 0.0 }
  0xf6   :  { %v197_v3 = vpop.f32.mrf.mxu0 }
  0xf7   :  { %v198_v4 = vadd.f32 %v1111_v19, %v197_v3 }
  0xf9   :  { %v218_v7 = vmax.f32 %v198_v4, 0.0 }
  0xfb   :  { %v227_v8 = vpack.c.bf16 %v218_v7, %v217_v6 }
  0xfd   :  { %335 = vmatmul.bf16.gmra.mxu1 %v227_v8 }
  0xfe   :  { %v200_v10 = vpop.f32.mrf.mxu0 }
  0xff   :  { %v201_v13 = vadd.f32 %v1111_v19, %v200_v10  ;;  %v843_v10 = vld [vmem:[#allocation5 + $0x18] sm:$0xff] }
 0x100   :  { %583 = vmatpush.bf16.msra.mxu3 %v843_v10 }
 0x101   :  { %v219_v16 = vmax.f32 %v201_v13, 0.0 }
 0x104   :  { %584 = vmatpush.bf16.msra.mxu3 %v842_v11 }
 0x106   :  { %v202_v14 = vpop.f32.mrf.mxu0 }
 0x107   :  { %v203_v15 = vadd.f32 %v1111_v19, %v202_v14  ;;  %v841_v14 = vld [vmem:[#allocation5 + $0x8] sm:$0xff] }
 0x108   :  { %585 = vmatpush.bf16.msra.mxu3 %v841_v14  ;;  %v903_v14 = vld [vmem:[%s1170_s8] ss:$0 sm:$0xff]  ;;  %s986_s8 = smov [#allocation7]  }
 0x109   :  { %v220_v17 = vmax.f32 %v203_v15, 0.0  ;;  %s664_s12 = sshll.u32 %s986_s8, 4  ;;  %s665_s12 = int_to_ptr.vmem [resolvable:$true] %s664_s12 }
 0x10b   :  { %v228_v18 = vpack.c.bf16 %v220_v17, %v219_v16 }
 0x10d   :  { %340 = vmatmul.bf16.gmra.mxu1 %v228_v18  ;;  %v840_v18 = vld [vmem:[#allocation5] sm:$0xff] }
 0x10e   :  { %586 = vmatpush.bf16.msra.mxu3 %v840_v18 }
 0x11a   :  { %v306_v20 = vpop.f32.mrf.mxu1 }
 0x11b   :  { %v307_v22 = vadd.f32 %v1132_v21, %v306_v20 }
 0x11d   :  { %v346_v25 = vmax.f32 %v307_v22, 0.0 }
 0x122   :  { %v308_v23 = vpop.f32.mrf.mxu1 }
 0x123   :  { %v309_v24 = vadd.f32 %v1132_v21, %v308_v23  ;;  %v902_v23 = vld [vmem:[%s1168_s6] ss:$0 sm:$0xff] }
 0x125   :  { %v347_v26 = vmax.f32 %v309_v24, 0.0 }
 0x127   :  { %v362_v27 = vpack.c.bf16 %v347_v26, %v346_v25 }
 0x129   :  { %446 = vmatmul.bf16.vlgmr.msra.gmra.mxu2 %v362_v27 }
 0x12a   :  { %v311_v19 = vpop.f32.mrf.mxu1 }
 0x12b   :  { %v312_v28 = vadd.f32 %v1132_v21, %v311_v19 }
 0x12d   :  { %v348_v31 = vmax.f32 %v312_v28, 0.0 }
 0x132   :  { %v313_v29 = vpop.f32.mrf.mxu1 }
 0x133   :  { %v314_v30 = vadd.f32 %v1132_v21, %v313_v29 }
 0x135   :  { %v349_v32 = vmax.f32 %v314_v30, 0.0 }
 0x137   :  { %v363_v33 = vpack.c.bf16 %v349_v32, %v348_v31 }
 0x139   :  { %451 = vmatmul.bf16.gmra.mxu2 %v363_v33 }
 0x13a   :  { %v316_v34 = vpop.f32.mrf.mxu1 }
 0x13b   :  { %v317_v35 = vadd.f32 %v1132_v21, %v316_v34 }
 0x13d   :  { %v350_v38 = vmax.f32 %v317_v35, 0.0 }
 0x142   :  { %v318_v36 = vpop.f32.mrf.mxu1 }
 0x143   :  { %v319_v37 = vadd.f32 %v1132_v21, %v318_v36 }
 0x145   :  { %v351_v39 = vmax.f32 %v319_v37, 0.0 }
 0x147   :  { %v364_v40 = vpack.c.bf16 %v351_v39, %v350_v38 }
 0x149   :  { %456 = vmatmul.bf16.gmra.mxu2 %v364_v40 }
 0x14a   :  { %v321_v41 = vpop.f32.mrf.mxu1 }
 0x14b   :  { %v322_v42 = vadd.f32 %v1132_v21, %v321_v41 }
 0x14d   :  { %v352_v45 = vmax.f32 %v322_v42, 0.0 }
 0x152   :  { %v323_v43 = vpop.f32.mrf.mxu1 }
 0x153   :  { %v324_v44 = vadd.f32 %v1132_v21, %v323_v43 }
 0x155   :  { %v353_v46 = vmax.f32 %v324_v44, 0.0 }
 0x157   :  { %v365_v47 = vpack.c.bf16 %v353_v46, %v352_v45 }
 0x159   :  { %461 = vmatmul.bf16.gmra.mxu2 %v365_v47 }
 0x15a   :  { %v326_v48 = vpop.f32.mrf.mxu1 }
 0x15b   :  { %v327_v49 = vadd.f32 %v1132_v21, %v326_v48 }
 0x15d   :  { %v354_v52 = vmax.f32 %v327_v49, 0.0 }
 0x162   :  { %v328_v50 = vpop.f32.mrf.mxu1 }
 0x163   :  { %v329_v51 = vadd.f32 %v1132_v21, %v328_v50 }
 0x165   :  { %v355_v53 = vmax.f32 %v329_v51, 0.0 }
 0x167   :  { %v366_v54 = vpack.c.bf16 %v355_v53, %v354_v52 }
 0x169   :  { %466 = vmatmul.bf16.gmra.mxu2 %v366_v54 }
 0x16a   :  { %v331_v55 = vpop.f32.mrf.mxu1 }
 0x16b   :  { %v332_v56 = vadd.f32 %v1132_v21, %v331_v55 }
 0x16d   :  { %v356_v59 = vmax.f32 %v332_v56, 0.0 }
 0x172   :  { %v333_v57 = vpop.f32.mrf.mxu1 }
 0x173   :  { %v334_v58 = vadd.f32 %v1132_v21, %v333_v57 }
 0x175   :  { %v357_v60 = vmax.f32 %v334_v58, 0.0 }
 0x177   :  { %v367_v61 = vpack.c.bf16 %v357_v60, %v356_v59 }
 0x179   :  { %471 = vmatmul.bf16.gmra.mxu2 %v367_v61 }
 0x17a   :  { %v336_v63 = vpop.f32.mrf.mxu1 }
 0x17b   :  { %v337_v2 = vadd.f32 %v1132_v21, %v336_v63 }
 0x17d   :  { %v358_v6 = vmax.f32 %v337_v2, 0.0 }
 0x182   :  { %v338_v3 = vpop.f32.mrf.mxu1 }
 0x183   :  { %v339_v4 = vadd.f32 %v1132_v21, %v338_v3 }
 0x185   :  { %v359_v7 = vmax.f32 %v339_v4, 0.0 }
 0x187   :  { %v368_v8 = vpack.c.bf16 %v359_v7, %v358_v6 }
 0x189   :  { %476 = vmatmul.bf16.gmra.mxu2 %v368_v8 }
 0x18a   :  { %v341_v9 = vpop.f32.mrf.mxu1 }
 0x18b   :  { %v342_v12 = vadd.f32 %v1132_v21, %v341_v9 }
 0x18d   :  { %v360_v16 = vmax.f32 %v342_v12, 0.0 }
 0x192   :  { %v343_v13 = vpop.f32.mrf.mxu1 }
 0x193   :  { %v344_v15 = vadd.f32 %v1132_v21, %v343_v13 }
 0x195   :  { %v361_v17 = vmax.f32 %v344_v15, 0.0 }
 0x197   :  { %v369_v20 = vpack.c.bf16 %v361_v17, %v360_v16 }
 0x199   :  { %481 = vmatmul.bf16.gmra.mxu2 %v369_v20 }
 0x1ac   :  { %v447_v22 = vpop.f32.mrf.mxu2 }
 0x1ad   :  { %v448_v24 = vadd.f32 %v902_v23, %v447_v22 }
 0x1af   :  { %v487_v27 = vmax.f32 %v448_v24, 0.0 }
 0x1b4   :  { %v449_v25 = vpop.f32.mrf.mxu2 }
 0x1b5   :  { %v450_v26 = vadd.f32 %v902_v23, %v449_v25 }
 0x1b7   :  { %v488_v19 = vmax.f32 %v450_v26, 0.0 }
 0x1b9   :  { %v503_v28 = vpack.c.bf16 %v488_v19, %v487_v27 }
 0x1bb   :  { %587 = vmatmul.bf16.vlgmr.msra.gmra.mxu3 %v503_v28 }
 0x1bc   :  { %v452_v21 = vpop.f32.mrf.mxu2 }
 0x1bd   :  { %v453_v29 = vadd.f32 %v902_v23, %v452_v21 }
 0x1bf   :  { %v489_v32 = vmax.f32 %v453_v29, 0.0 }
 0x1c4   :  { %v454_v30 = vpop.f32.mrf.mxu2 }
 0x1c5   :  { %v455_v31 = vadd.f32 %v902_v23, %v454_v30 }
 0x1c7   :  { %v490_v33 = vmax.f32 %v455_v31, 0.0 }
 0x1c9   :  { %v504_v34 = vpack.c.bf16 %v490_v33, %v489_v32 }
 0x1cb   :  { %592 = vmatmul.bf16.gmra.mxu3 %v504_v34 }
 0x1cc   :  { %v457_v35 = vpop.f32.mrf.mxu2 }
 0x1cd   :  { %v458_v36 = vadd.f32 %v902_v23, %v457_v35 }
 0x1cf   :  { %v491_v39 = vmax.f32 %v458_v36, 0.0 }
 0x1d4   :  { %v459_v37 = vpop.f32.mrf.mxu2 }
 0x1d5   :  { %v460_v38 = vadd.f32 %v902_v23, %v459_v37 }
 0x1d7   :  { %v492_v40 = vmax.f32 %v460_v38, 0.0 }
 0x1d9   :  { %v505_v41 = vpack.c.bf16 %v492_v40, %v491_v39 }
 0x1db   :  { %597 = vmatmul.bf16.gmra.mxu3 %v505_v41 }
 0x1dc   :  { %v462_v42 = vpop.f32.mrf.mxu2 }
 0x1dd   :  { %v463_v43 = vadd.f32 %v902_v23, %v462_v42 }
 0x1df   :  { %v493_v46 = vmax.f32 %v463_v43, 0.0 }
 0x1e4   :  { %v464_v44 = vpop.f32.mrf.mxu2 }
 0x1e5   :  { %v465_v45 = vadd.f32 %v902_v23, %v464_v44 }
 0x1e7   :  { %v494_v47 = vmax.f32 %v465_v45, 0.0 }
 0x1e9   :  { %v506_v48 = vpack.c.bf16 %v494_v47, %v493_v46 }
 0x1eb   :  { %602 = vmatmul.bf16.gmra.mxu3 %v506_v48 }
 0x1ec   :  { %v467_v49 = vpop.f32.mrf.mxu2 }
 0x1ed   :  { %v468_v50 = vadd.f32 %v902_v23, %v467_v49 }
 0x1ef   :  { %v495_v53 = vmax.f32 %v468_v50, 0.0 }
 0x1f4   :  { %v469_v51 = vpop.f32.mrf.mxu2 }
 0x1f5   :  { %v470_v52 = vadd.f32 %v902_v23, %v469_v51 }
 0x1f7   :  { %v496_v54 = vmax.f32 %v470_v52, 0.0 }
 0x1f9   :  { %v507_v55 = vpack.c.bf16 %v496_v54, %v495_v53 }
 0x1fb   :  { %607 = vmatmul.bf16.gmra.mxu3 %v507_v55 }
 0x1fc   :  { %v472_v56 = vpop.f32.mrf.mxu2 }
 0x1fd   :  { %v473_v57 = vadd.f32 %v902_v23, %v472_v56 }
 0x1ff   :  { %v497_v60 = vmax.f32 %v473_v57, 0.0 }
 0x204   :  { %v474_v58 = vpop.f32.mrf.mxu2 }
 0x205   :  { %v475_v59 = vadd.f32 %v902_v23, %v474_v58 }
 0x207   :  { %v498_v61 = vmax.f32 %v475_v59, 0.0 }
 0x209   :  { %v508_v62 = vpack.c.bf16 %v498_v61, %v497_v60 }
 0x20b   :  { %612 = vmatmul.bf16.gmra.mxu3 %v508_v62 }
 0x20c   :  { %v477_v63 = vpop.f32.mrf.mxu2 }
 0x20d   :  { %v478_v0 = vadd.f32 %v902_v23, %v477_v63 }
 0x20f   :  { %v499_v3 = vmax.f32 %v478_v0, 0.0 }
 0x214   :  { %v479_v1 = vpop.f32.mrf.mxu2 }
 0x215   :  { %v480_v2 = vadd.f32 %v902_v23, %v479_v1 }
 0x217   :  { %v500_v4 = vmax.f32 %v480_v2, 0.0 }
 0x219   :  { %v509_v5 = vpack.c.bf16 %v500_v4, %v499_v3 }
 0x21b   :  { %617 = vmatmul.bf16.gmra.mxu3 %v509_v5 }
 0x21c   :  { %v482_v6 = vpop.f32.mrf.mxu2 }
 0x21d   :  { %v483_v7 = vadd.f32 %v902_v23, %v482_v6 }
 0x21f   :  { %v501_v10 = vmax.f32 %v483_v7, 0.0 }
 0x224   :  { %v484_v8 = vpop.f32.mrf.mxu2 }
 0x225   :  { %v485_v9 = vadd.f32 %v902_v23, %v484_v8 }
 0x227   :  { %v502_v11 = vmax.f32 %v485_v9, 0.0 }
 0x229   :  { %v510_v12 = vpack.c.bf16 %v502_v11, %v501_v10 }
 0x22b   :  { %622 = vmatmul.bf16.gmra.mxu3 %v510_v12 }
 0x23e   :  { %v588_v13 = vpop.f32.mrf.mxu3 }
 0x23f   :  { %v589_v16 = vadd.f32 %v903_v14, %v588_v13 }
 0x246   :  { %v590_v15 = vpop.f32.mrf.mxu3 }
 0x247   :  { %v591_v17 = vadd.f32 %v903_v14, %v590_v15 }
 0x249   :  { %v851_v18 = vpack.c.bf16 %v591_v17, %v589_v16 }
 0x24b   :  { %852 = vst [vmem:[#allocation7] sm:$0xff] %v851_v18  }
 0x24e   :  { %v593_v20 = vpop.f32.mrf.mxu3 }
 0x24f   :  { %v594_v24 = vadd.f32 %v903_v14, %v593_v20 }
 0x256   :  { %v595_v22 = vpop.f32.mrf.mxu3 }
 0x257   :  { %v596_v25 = vadd.f32 %v903_v14, %v595_v22 }
 0x259   :  { %v856_v26 = vpack.c.bf16 %v596_v25, %v594_v24 }
 0x25b   :  { %888 = vst [vmem:[#allocation7 + $0x8] sm:$0xff] %v856_v26  }
 0x25e   :  { %v598_v23 = vpop.f32.mrf.mxu3 }
 0x25f   :  { %v599_v19 = vadd.f32 %v903_v14, %v598_v23 }
 0x266   :  { %v600_v27 = vpop.f32.mrf.mxu3 }
 0x267   :  { %v601_v28 = vadd.f32 %v903_v14, %v600_v27 }
 0x269   :  { %v861_v21 = vpack.c.bf16 %v601_v28, %v599_v19 }
 0x26b   :  { %889 = vst [vmem:[#allocation7 + $0x10] sm:$0xff] %v861_v21  }
 0x26e   :  { %v603_v29 = vpop.f32.mrf.mxu3 }
 0x26f   :  { %v604_v31 = vadd.f32 %v903_v14, %v603_v29 }
 0x276   :  { %v605_v30 = vpop.f32.mrf.mxu3 }
 0x277   :  { %v606_v32 = vadd.f32 %v903_v14, %v605_v30 }
 0x279   :  { %v866_v33 = vpack.c.bf16 %v606_v32, %v604_v31 }
 0x27b   :  { %890 = vst [vmem:[#allocation7 + $0x18] sm:$0xff] %v866_v33  }
 0x27e   :  { %v608_v34 = vpop.f32.mrf.mxu3 }
 0x27f   :  { %v609_v36 = vadd.f32 %v903_v14, %v608_v34 }
 0x286   :  { %v610_v35 = vpop.f32.mrf.mxu3 }
 0x287   :  { %v611_v37 = vadd.f32 %v903_v14, %v610_v35 }
 0x289   :  { %v871_v38 = vpack.c.bf16 %v611_v37, %v609_v36 }
 0x28b   :  { %891 = vst [vmem:[#allocation7 + $0x20] sm:$0xff] %v871_v38  }
 0x28e   :  { %v613_v39 = vpop.f32.mrf.mxu3 }
 0x28f   :  { %v614_v41 = vadd.f32 %v903_v14, %v613_v39 }
 0x296   :  { %v615_v40 = vpop.f32.mrf.mxu3 }
 0x297   :  { %v616_v42 = vadd.f32 %v903_v14, %v615_v40 }
 0x299   :  { %v876_v43 = vpack.c.bf16 %v616_v42, %v614_v41 }
 0x29b   :  { %892 = vst [vmem:[#allocation7 + $0x28] sm:$0xff] %v876_v43  }
 0x29e   :  { %v618_v44 = vpop.f32.mrf.mxu3 }
 0x29f   :  { %v619_v46 = vadd.f32 %v903_v14, %v618_v44 }
 0x2a6   :  { %v620_v45 = vpop.f32.mrf.mxu3 }
 0x2a7   :  { %v621_v47 = vadd.f32 %v903_v14, %v620_v45 }
 0x2a9   :  { %v881_v48 = vpack.c.bf16 %v621_v47, %v619_v46 }
 0x2ab   :  { %893 = vst [vmem:[#allocation7 + $0x30] sm:$0xff] %v881_v48  }
 0x2ae   :  { %v623_v49 = vpop.f32.mrf.mxu3 }
 0x2af   :  { %v624_v51 = vadd.f32 %v903_v14, %v623_v49 }
 0x2b6   :  { %v625_v50 = vpop.f32.mrf.mxu3 }
 0x2b7   :  { %v626_v52 = vadd.f32 %v903_v14, %v625_v50 }
 0x2b9   :  { %v886_v53 = vpack.c.bf16 %v626_v52, %v624_v51 }
 0x2bb   :  { %894 = vst [vmem:[#allocation7 + $0x38] sm:$0xff] %v886_v53  }
 0x2bc   :  { %672 = dma.vmem_to_hbm [thread:$0]  %s665_s12, 1024, %s667_s15, [#allocation4], %s983_s17, %s983_s17, %s984_s18  }
 0x2bd   :  { %980 = dma.done.wait [#allocation4], 1024  }
 0x2be   :  { %981 = vsyncadd [#allocation4], 4294966272 }
 0x2bf   :  { %677 = vsyncpa [#allocation3], 1 }
 0x2c0   :  { %678 = vsyncpa [#allocation6], 1 }
 0x2c1   :  { %679 = vsyncpa [#allocation4], 1 }

</bundles_post_ra>
